<compile_context>
chip_gen: v6e
topology: v6e:2x2x1
jax: 0.10.0
libtpu: 0.0.40
codegen_flags: <defaults>
</compile_context>

<pallas_src>
import math

import jax
import jax.numpy as jnp
from jax.experimental import pallas as pl
from jax.experimental.pallas import tpu as pltpu

LANES = 128  # vreg lane width (last dim must be lane-dense)


def h_sigmoid_kernel(x_ref, o_ref):
    """o = relu6(x + 3) * (1/6), elementwise on a (tile_rows, 128) VMEM tile."""
    x = x_ref[...]
    o_ref[...] = jnp.minimum(jnp.maximum(x + 3.0, 0.0), 6.0) * (1.0 / 6.0)


def _round_up(a, b):
    return (a + b - 1) // b * b


def _sublane_granule(dtype):
    # 8 sublanes for 4-byte dtypes, 16 for 2-byte, 32 for 1-byte (packing).
    itemsize = jnp.dtype(dtype).itemsize
    return max(8, 32 // itemsize)


def _device_tile_config(itemsize):
    """Pick max tile rows + VMEM cap per TPU generation (best-effort)."""
    try:
        kind = jax.devices()[0].device_kind.lower()
    except Exception:
        kind = ""
    if "v7" in kind:
        tile_bytes = 8 * 1024 * 1024      # 8 MiB/buffer on v7x (3.2 TB/s HBM)
        vmem_limit = 48 * 1024 * 1024     # headroom under 64 MiB physical
    else:
        tile_bytes = 4 * 1024 * 1024      # 4 MiB/buffer (85%+ roofline on v6e)
        vmem_limit = 32 * 1024 * 1024
    return tile_bytes // (LANES * itemsize), vmem_limit


@jax.jit
def h_sigmoid_pallas(x):
    orig_shape = x.shape
    dtype = x.dtype
    total = math.prod(orig_shape)

    granule = _sublane_granule(dtype)
    itemsize = jnp.dtype(dtype).itemsize
    max_tile_rows, vmem_limit = _device_tile_config(itemsize)

    # Lane-dense (rows, 128) slab: full unmasked 128-lane vector stores.
    rows = -(-total // LANES)
    padded_total = rows * LANES  # pads at most 127 elements (one-row pad)

    x_flat = x.reshape(-1)
    if padded_total != total:
        # TODO(synk): ragged (<128-tail) sizes take a tiny one-row pad/slice;
        # aligned sizes (the common case) avoid all wrapper-side HBM copies.
        x_flat = jnp.pad(x_flat, (0, padded_total - total))
    x2d = x_flat.reshape(rows, LANES)

    # Tile selection: at least 2 grid steps when possible (v7x megacore),
    # capped at the per-generation VMEM-friendly tile, rounded to the sublane
    # granule. The trailing partial block is masked by Pallas (no array pad).
    if rows <= granule:
        tile_rows = rows  # block == full array dims -> always a legal block
    else:
        half_rows = _round_up(-(-rows // 2), granule)
        tile_rows = max(granule, min(max_tile_rows, half_rows))
    grid = (pl.cdiv(rows, tile_rows),)

    out2d = pl.pallas_call(
        h_sigmoid_kernel,
        grid=grid,
        in_specs=[pl.BlockSpec((tile_rows, LANES), lambda i: (i, 0))],
        out_specs=pl.BlockSpec((tile_rows, LANES), lambda i: (i, 0)),
        out_shape=jax.ShapeDtypeStruct((rows, LANES), dtype),
        compiler_params=pltpu.CompilerParams(
            # Elementwise: every grid step is independent -> "parallel"
            # (lets v7x's 2 TensorCores split the row tiles).
            dimension_semantics=("parallel",),
            vmem_limit_bytes=vmem_limit,
        ),
    )(x2d)

    if padded_total != total:
        return out2d.reshape(-1)[:total].reshape(orig_shape)
    return out2d.reshape(orig_shape)


def h_sigmoid_reference(x):
    return jnp.minimum(jnp.maximum(x + 3.0, 0.0), 6.0) / 6.0


if __name__ == "__main__":
    key = jax.random.PRNGKey(0)
    k1, k2 = jax.random.split(key)

    # Primary test: NCHW activation shape implied by the module's usage
    # (element count divisible by 128 -> zero-copy fast path).
    x = jax.random.normal(k1, (2, 4, 16, 16), jnp.float32) * 4.0  # spans +/-3 knees
    out = jax.block_until_ready(h_sigmoid_pallas(x))
    assert out.shape == x.shape, out.shape
    ref = h_sigmoid_reference(x)
    max_err = float(jnp.max(jnp.abs(out - ref)))
    if max_err > 1e-6:
        raise AssertionError(f"h_sigmoid mismatch (aligned shape), max_err={max_err}")

    # Secondary test: ragged shape exercises the one-row pad / slice tail path.
    x2 = jax.random.normal(k2, (3, 5, 7, 9), jnp.float32) * 4.0
    out2 = jax.block_until_ready(h_sigmoid_pallas(x2))
    ref2 = h_sigmoid_reference(x2)
    max_err2 = float(jnp.max(jnp.abs(out2 - ref2)))
    if max_err2 > 1e-6:
        raise AssertionError(f"h_sigmoid mismatch (ragged shape), max_err={max_err2}")

    print("KERNEL_OK")
</pallas_src>

<mosaic_0001>
module attributes {stable_mosaic.version = 11 : i64} {
  func.func @h_sigmoid_kernel(%arg0: i32, %arg1: memref<8x128xf32, #tpu.memory_space<vmem>>, %arg2: memref<8x128xf32, #tpu.memory_space<vmem>>) attributes {dimension_semantics = [#tpu.dimension_semantics<parallel>], iteration_bounds = array<i64: 2>, scalar_prefetch = 0 : i64, scratch_operands = 0 : i64, tpu.core_type = #tpu.core_type<tc>, window_params = [{transform_indices = @transform_0, window_bounds = array<i64: 8, 128>}, {transform_indices = @transform_1, window_bounds = array<i64: 8, 128>}]} {
    %c0 = arith.constant 0 : index
    %c0_0 = arith.constant 0 : index
    %0 = vector.load %arg1[%c0, %c0_0] : memref<8x128xf32, #tpu.memory_space<vmem>>, vector<8x128xf32>
    %cst = arith.constant 3.000000e+00 : f32
    %1 = vector.broadcast %cst : f32 to vector<8x128xf32>
    %2 = arith.addf %0, %1 : vector<8x128xf32>
    %cst_1 = arith.constant 0.000000e+00 : f32
    %3 = vector.broadcast %cst_1 : f32 to vector<8x128xf32>
    %4 = arith.maximumf %2, %3 : vector<8x128xf32>
    %cst_2 = arith.constant 6.000000e+00 : f32
    %5 = vector.broadcast %cst_2 : f32 to vector<8x128xf32>
    %6 = arith.minimumf %4, %5 : vector<8x128xf32>
    %cst_3 = arith.constant 0.166666672 : f32
    %7 = vector.broadcast %cst_3 : f32 to vector<8x128xf32>
    %8 = arith.mulf %6, %7 : vector<8x128xf32>
    %c0_4 = arith.constant 0 : index
    %c0_5 = arith.constant 0 : index
    %9 = vector.load %arg2[%c0_4, %c0_5] : memref<8x128xf32, #tpu.memory_space<vmem>>, vector<8x128xf32>
    tpu.vector_store %arg2[%c0_4, %c0_5], %8 {strides = array<i32>} : memref<8x128xf32, #tpu.memory_space<vmem>>, vector<8x128xf32>,
    return
  }
  func.func @transform_0(%arg0: i32) -> (i32, i32) {
    %c0_i32 = arith.constant 0 : i32
    %c0_i32_0 = arith.constant 0 : i32
    return %arg0, %c0_i32 : i32, i32
  }
  func.func @transform_1(%arg0: i32) -> (i32, i32) {
    %c0_i32 = arith.constant 0 : i32
    %c0_i32_0 = arith.constant 0 : i32
    return %arg0, %c0_i32 : i32, i32
  }
}

</mosaic_0001>

<bundles_post_ra>
// kernel: h_sigmoid_pallas.1
= control target key start
LH: loop header
LB: loop body
LE: loop exit
PB: predicated region body
PF: predicated region fallthrough
CT: control target
= control target key end

     0   :  { %s192_s6 = smov 0   ;;  %s212_s0 = inlined_call_operand.vmem [shape: f32[16,128], index: 0, kind: input, shape index: {}]   ;;  %s213_s1 = inlined_call_operand.vmem [shape: f32[16,128], index: 1, kind: output, shape index: {}]  }
   0x1 LB: > { %s171_s7 = sadd.s32 4294967295, %s194_s6   ;;  %p175_p0 = scmp.ge.s32.totalorder %s194_s6, 1  ;;  %s194_s6 = sphi %s192_s6, %s11_s6  }
   0x2   : > { %p86_p1 = scmp.lt.s32.totalorder %s194_s6, 3 }
   0x4   : > { %p87_p2 = pnand %p175_p0, %p86_p1 }
   0x5   : > { %p104_p3 = scmp.lt.s32.totalorder (!%p87_p2), %s171_s7, 1 }
   0x6   : > { %90 = sbr.rel (%p87_p2) target bundleno = 24 (0x18), region = 24 }
   0xb   : > { %s215_s7 = smov (!%p104_p3, %s171_s7), 1 }
   0xc   : > { %s176_s8 = sshll.u32 %s215_s7, 3 }
   0xd   : > { %s107_s11 = scalar_lea.vmem %s212_s0, %s176_s8  ;;  %s111_s14 = scalar_lea.vmem %s213_s1, %s176_s8 }
   0xe   : > { %v112_v0 = vld [vmem:[%s107_s11] sm:$0xff] }
   0xf   : > { %v113_v1 = vadd.f32 3.0, %v112_v0 }
  0x11   : > { %v114_v2 = vmax.f32 %v113_v1, 0.0 }
  0x13   : > { %v115_v3 = vmin.f32 %v114_v2, 6.0 }
  0x15   : > { %v116_v4 = vmul.f32 0.16666667, %v115_v3 }
  0x17   : > { %117 = vst [vmem:[%s111_s14] sm:$0xff] %v116_v4 }
  0x18 PF: > { %s11_s6 = sadd.s32 1, %s194_s6  }
  0x19   : > { %p8_p4 = scmp.ge.s32.totalorder %s11_s6, 4  }
  0x1b   :  { %10 = sbr.rel (!%p8_p4) target bundleno = 1 (0x1), region = 54 }

</bundles_post_ra>
